<compile_context>
chip_gen: v7x
topology: tpu7x:2x2x1
jax: 0.10.0
libtpu: 0.0.40
codegen_flags: <defaults>
</compile_context>

<pallas_src>
import jax
import jax.numpy as jnp
import numpy as np
from jax import lax
from jax.experimental import pallas as pl
from jax.experimental.pallas import tpu as pltpu

_EPS = 1e-12                       # F.normalize default eps
_VMEM_BLOCK_BUDGET = 3 * 1024 * 1024   # bytes per (in or out) block buffer, padded


# ----------------------------------------------------------------------------
# Pallas kernel: RMSNorm over the channel axis for one (batch, spatial) tile.
# ----------------------------------------------------------------------------
def _rmsnorm_kernel(x_ref, g_ref, o_ref):
    # x_ref : (Bb, C, T)  input tile (native dtype), lanes = spatial
    # g_ref : (1,  C, 1)  pre-fused  g * sqrt(C)  (f32)
    # o_ref : (Bb, C, T)  output tile (native dtype)
    x = x_ref[...].astype(jnp.float32)                     # upcast in-register
    ssq = jnp.sum(x * x, axis=1, keepdims=True)            # (Bb, 1, T) per-lane
    inv = lax.rsqrt(jnp.maximum(ssq, _EPS * _EPS))         # == 1/max(||x||, eps)
    o_ref[...] = ((x * inv) * g_ref[...]).astype(o_ref.dtype)


# ----------------------------------------------------------------------------
# Block sizing: big lane-dense blocks under a per-generation-safe VMEM budget.
# ----------------------------------------------------------------------------
def _choose_blocking(B, C, hw, itemsize):
    # VMEM padding of the second-minor (channel) axis: 8 rows for 32-bit,
    # 16 for 16-bit packed dtypes.
    sub = 16 if itemsize == 2 else 8
    c_pad = -(-C // sub) * sub
    # Max lanes (Bb * T) such that one padded block buffer fits the budget.
    max_lanes = max(128, _VMEM_BLOCK_BUDGET // (c_pad * itemsize))

    # --- spatial tile T ---
    if hw <= max_lanes:
        T = hw                                   # full-extent block (always legal)
    else:
        cap = (max_lanes // 128) * 128
        T = None
        t = cap
        while t >= 128:                          # largest 128-multiple divisor
            if hw % t == 0:
                T = t
                break
            t -= 128
        if T is None:
            T = cap                              # cdiv grid; boundary lanes masked
    n_s = -(-hw // T)

    # --- batch block Bb: largest divisor of B that fits, keeping >= 2 grid
    #     steps overall (so both v7x TensorCores stream) when possible. ---
    Bb = 1
    for bb in range(B, 0, -1):
        if B % bb:
            continue
        if bb * T > max_lanes:
            continue
        if (B // bb) * n_s < 2 and B * n_s >= 2:
            continue
        Bb = bb
        break
    return Bb, T, n_s


# ----------------------------------------------------------------------------
# Wrapper: NCHW in / NCHW out (native dtype), parameters fused.
# ----------------------------------------------------------------------------
@jax.jit
def prenorm_forward(x_nchw, g):
    """PreNorm forward: RMSNorm over channels, then the wrapped fn (identity)."""
    B, C, H, W = x_nchw.shape
    hw = H * W
    Bb, T, n_s = _choose_blocking(B, C, hw, x_nchw.dtype.itemsize)

    x3 = x_nchw.reshape(B, C, hw)                                    # no dtype cast
    g3 = (g.astype(jnp.float32) * (float(C) ** 0.5)).reshape(1, C, 1)  # fuse g*sqrt(C)

    grid = (B // Bb, n_s)
    y = pl.pallas_call(
        _rmsnorm_kernel,
        out_shape=jax.ShapeDtypeStruct((B, C, hw), x_nchw.dtype),
        grid_spec=pltpu.PrefetchScalarGridSpec(
            num_scalar_prefetch=0,
            grid=grid,
            in_specs=[
                pl.BlockSpec((Bb, C, T), lambda b, s: (b, 0, s)),
                pl.BlockSpec((1, C, 1), lambda b, s: (0, 0, 0)),
            ],
            out_specs=pl.BlockSpec((Bb, C, T), lambda b, s: (b, 0, s)),
        ),
        compiler_params=pltpu.CompilerParams(
            dimension_semantics=("parallel", "parallel")),
    )(x3, g3)

    y = y.reshape(B, C, H, W)
    # TODO(synk): PreNorm wraps an arbitrary `fn` (not specified in the spec);
    # applied as identity here.
    return y


# ----------------------------------------------------------------------------
# Pure-JAX reference (mirrors F.normalize(x, dim=1) * g * sqrt(C))
# ----------------------------------------------------------------------------
def prenorm_ref(x_nchw, g):
    C = x_nchw.shape[1]
    x = x_nchw.astype(jnp.float32)
    n = jnp.sqrt(jnp.sum(x * x, axis=1, keepdims=True))
    y = x / jnp.maximum(n, _EPS) * g.astype(jnp.float32) * (float(C) ** 0.5)
    return y  # fn = identity


if __name__ == "__main__":
    B, C, H, W = 2, 4, 16, 16

    key = jax.random.PRNGKey(0)
    kx, kg = jax.random.split(key)
    x = jax.random.normal(kx, (B, C, H, W), jnp.float32)
    # RMSNorm initializes g to ones; perturb it so the scale path is exercised.
    g = 1.0 + 0.1 * jax.random.normal(kg, (1, C, 1, 1), jnp.float32)

    # f32 path
    out = jax.block_until_ready(prenorm_forward(x, g))
    ref = prenorm_ref(x, g)
    np.testing.assert_allclose(np.asarray(out), np.asarray(ref),
                               rtol=1e-5, atol=1e-5)
    assert out.shape == (B, C, H, W) and out.dtype == x.dtype

    # native bf16 I/O path (output stays bf16; math done in f32 in-register)
    x_bf = x.astype(jnp.bfloat16)
    out_bf = jax.block_until_ready(prenorm_forward(x_bf, g))
    assert out_bf.dtype == jnp.bfloat16
    np.testing.assert_allclose(np.asarray(out_bf).astype(np.float32),
                               np.asarray(prenorm_ref(x_bf, g)),
                               rtol=2e-2, atol=2e-2)

    # awkward spatial extent (hw not a multiple of 128) still compiles/runs
    x_odd = jax.random.normal(kx, (B, C, 20, 20), jnp.float32)
    out_odd = jax.block_until_ready(prenorm_forward(x_odd, g))
    np.testing.assert_allclose(np.asarray(out_odd),
                               np.asarray(prenorm_ref(x_odd, g)),
                               rtol=1e-5, atol=1e-5)

    print("KERNEL_OK")
</pallas_src>

<mosaic_0001>
module attributes {stable_mosaic.version = 11 : i64} {
  func.func @_rmsnorm_kernel(%arg0: i32, %arg1: i32, %arg2: memref<1x4x256xf32, #tpu.memory_space<vmem>>, %arg3: memref<1x4x1xf32, #tpu.memory_space<vmem>>, %arg4: memref<1x4x256xf32, #tpu.memory_space<vmem>>) attributes {dimension_semantics = [#tpu.dimension_semantics<parallel>, #tpu.dimension_semantics<parallel>], iteration_bounds = array<i64: 2, 1>, scalar_prefetch = 0 : i64, scratch_operands = 0 : i64, tpu.core_type = #tpu.core_type<tc>, window_params = [{transform_indices = @transform_0, window_bounds = array<i64: 1, 4, 256>}, {pipeline_mode = #tpu.pipeline_mode<synchronous>, transform_indices = @transform_1, window_bounds = array<i64: 1, 4, 1>}, {transform_indices = @transform_2, window_bounds = array<i64: 1, 4, 256>}]} {
    %c0 = arith.constant 0 : index
    %c0_0 = arith.constant 0 : index
    %c0_1 = arith.constant 0 : index
    %0 = vector.load %arg2[%c0, %c0_0, %c0_1] : memref<1x4x256xf32, #tpu.memory_space<vmem>>, vector<1x4x256xf32>
    %1 = arith.mulf %0, %0 : vector<1x4x256xf32>
    %cst = arith.constant dense<0.000000e+00> : vector<1x256xf32>
    %2 = vector.multi_reduction <add>, %1, %cst [1] : vector<1x4x256xf32> to vector<1x256xf32>
    %3 = vector.shape_cast %2 : vector<1x256xf32> to vector<1x1x256xf32>
    %cst_2 = arith.constant 1.000000e-24 : f32
    %4 = vector.broadcast %cst_2 : f32 to vector<1x1x256xf32>
    %5 = arith.maximumf %3, %4 : vector<1x1x256xf32>
    %6 = math.rsqrt %5 : vector<1x1x256xf32>
    %7 = vector.broadcast %6 : vector<1x1x256xf32> to vector<1x4x256xf32>
    %8 = arith.mulf %0, %7 : vector<1x4x256xf32>
    %c0_3 = arith.constant 0 : index
    %c0_4 = arith.constant 0 : index
    %c0_5 = arith.constant 0 : index
    %9 = vector.load %arg3[%c0_3, %c0_4, %c0_5] : memref<1x4x1xf32, #tpu.memory_space<vmem>>, vector<1x4x1xf32>
    %10 = vector.broadcast %9 : vector<1x4x1xf32> to vector<1x4x256xf32>
    %11 = arith.mulf %8, %10 : vector<1x4x256xf32>
    %c0_6 = arith.constant 0 : index
    %c0_7 = arith.constant 0 : index
    %c0_8 = arith.constant 0 : index
    %12 = vector.load %arg4[%c0_6, %c0_7, %c0_8] : memref<1x4x256xf32, #tpu.memory_space<vmem>>, vector<1x4x256xf32>
    tpu.vector_store %arg4[%c0_6, %c0_7, %c0_8], %11 {strides = array<i32>} : memref<1x4x256xf32, #tpu.memory_space<vmem>>, vector<1x4x256xf32>,
    return
  }
  func.func @transform_0(%arg0: i32, %arg1: i32) -> (i32, i32, i32) {
    %c0_i32 = arith.constant 0 : i32
    %c0_i32_0 = arith.constant 0 : i32
    return %arg0, %c0_i32, %arg1 : i32, i32, i32
  }
  func.func @transform_1(%arg0: i32, %arg1: i32) -> (i32, i32, i32) {
    %c0_i32 = arith.constant 0 : i32
    %c0_i32_0 = arith.constant 0 : i32
    %c0_i32_1 = arith.constant 0 : i32
    %c0_i32_2 = arith.constant 0 : i32
    return %c0_i32, %c0_i32_0, %c0_i32_1 : i32, i32, i32
  }
  func.func @transform_2(%arg0: i32, %arg1: i32) -> (i32, i32, i32) {
    %c0_i32 = arith.constant 0 : i32
    %c0_i32_0 = arith.constant 0 : i32
    return %arg0, %c0_i32, %arg1 : i32, i32, i32
  }
}

</mosaic_0001>

<bundles_post_ra>
// kernel: prenorm_forward.1
= control target key start
LH: loop header
LB: loop body
LE: loop exit
PB: predicated region body
PF: predicated region fallthrough
CT: control target
= control target key end

     0   :  { %s399_s9 = smov 0   ;;  %s401_s10 = smov 0   ;;  %s442_s0 = inlined_call_operand.vmem [shape: f32[2,4,256], index: 0, kind: input, shape index: {}]   ;;  %s443_s1 = inlined_call_operand.vmem [shape: f32[1,4,1], index: 1, kind: input, shape index: {}]   ;;  %s444_s2 = inlined_call_operand.vmem [shape: f32[2,4,256], index: 2, kind: output, shape index: {}]  }
   0x1   :  { %s403_s11 = smov 0  }
   0x2 LB: > { %s24_s12 = sadd.s32 1, %s376_s10  ;;  %p318_p0 = scmp.ge.s32.totalorder %s380_s11, 1  ;;  %s380_s11 = sphi %s403_s11, %s12_s11   ;;  %s376_s10 = sphi %s401_s10, %s446_s10   ;;  %s372_s9 = sphi %s399_s9, %s445_s9  }
   0x3   : > { %p26_p1 = scmp.ge.s32.totalorder %s24_s12, 2  ;;  %p133_p2 = scmp.lt.s32.totalorder %s380_s11, 3 }
   0x5   : > { %s448_s12 = smov (%p26_p1, %s24_s12), 0  ;;  %p134_p3 = pnand %p318_p0, %p133_p2 }
   0x6   : > { %v212_v0 = vld [vmem:[%s443_s1] sm:$0xf] (!%p134_p3)  ;;  %v382_v1 = vmov (!%p134_p3), 0   ;;  %p164_p4 = scmp.lt.s32.totalorder (!%p134_p3), %s372_s9, 1  ;;  %vm188_vm0 = vcmask (!%p134_p3), 1043456   ;;  %v220_v23 = vlaneseq (!%p134_p3) }
   0x7   : > { %137 = sbr.rel (%p134_p3) target bundleno = 141 (0x8d), region = 28  ;;  %353 = vset.pattern.permute.xlu0 (!%p134_p3), %v382_v1  ;;  %v383_v21 = vmov (!%p134_p3), 839922192  }
   0x8   : > { %215 = vperm.xlu0 (!%p134_p3), %353, %v212_v0   ;;  %v218_v22 = vunpack.c.l.s4 (!%p134_p3), %v383_v21  ;;  %v221_v27 = vshrl.u32 (!%p134_p3), %v220_v23, 7 }
   0xa   : > { %v219_v26 = vunpack.c.0.s8 (!%p134_p3), %v218_v22 }
   0xc   : > { %v222_v29 = vsub.s32 (!%p134_p3), %v219_v26, %v221_v27 }
   0xe   : > { %s450_s9 = smov (!%p164_p4, %s372_s9), 1 }
   0xf   : > { %s325_s15 = sshll.u32 %s450_s9, 3 }
  0x10   : > { %s171_s18 = scalar_lea.vmem %s442_s0, %s325_s15  ;;  %s181_s21 = scalar_lea.vmem %s444_s2, %s325_s15 }
  0x11   : > { %v183_v2 = vld [vmem:[%s171_s18] sm:$0xff] }
  0x12   : > { %v184_v3 = vmul.f32 %v183_v2, %v183_v2 }
  0x14   : > { %v186_v4 = vcombine.high %v184_v3, %v184_v3  ;;  %v189_v5 = vsel %vm188_vm0, %v184_v3, 0.0 }
  0x15   : > { %v190_v7 = vrot.slane %v189_v5, 4 }
  0x16   : > { %v196_v6 = vsel %vm188_vm0, %v186_v4, 0.0 }
  0x17   : > { %v197_v8 = vrot.slane %v196_v6, 4  ;;  %v191_v9 = vadd.f32 %v190_v7, %v189_v5 }
  0x19   : > { %v198_v10 = vadd.f32 %v197_v8, %v196_v6  ;;  %v192_v11 = vrot.slane %v191_v9, 2 }
  0x1b   : > { %v199_v12 = vrot.slane %v198_v10, 2  ;;  %v193_v13 = vadd.f32 %v192_v11, %v191_v9 }
  0x1d   : > { %v200_v14 = vadd.f32 %v199_v12, %v198_v10  ;;  %v194_v15 = vrot.slane %v193_v13, 1 }
  0x1f   : > { %v201_v16 = vrot.slane %v200_v14, 1  ;;  %v195_v17 = vadd.f32 %v194_v15, %v193_v13 }
  0x21   : > { %v202_v18 = vadd.f32 %v201_v16, %v200_v14  ;;  %v203_v19 = vmax.f32 %v195_v17, 1e-24 }
  0x23   : > { %v204_v20 = vmax.f32 %v202_v18, 1e-24  ;;  %354 = vrsqrt.f32 %v203_v19 }
  0x25   : > { %356 = vrsqrt.f32 %v204_v20 }
  0x2d   : > { %v355_v24 = vpop.eup %354 }
  0x2f   : > { %v357_v25 = vpop.eup %356 }
  0x30   : > { %v209_v28 = vcombine.low %v355_v24, %v357_v25 }
  0x32   : > { %v211_v30 = vmul.f32 %v209_v28, %v183_v2 }
  0x87   : > { %v216_v31 = vpop.permute.xlu0 %215 }
  0x88   : > { %v223_v32 = vrot.slane %v216_v31, %v222_v29 }
  0x8a   : > { %v225_v33 = vmul.f32 %v223_v32, %v211_v30 }
  0x8c   : > { %226 = vst [vmem:[%s181_s21] sm:$0xff] %v225_v33 }
  0x8d PF: > { %s12_s11 = sadd.s32 1, %s380_s11   ;;  %s445_s9 = smov %s376_s10 }
  0x8e   : > { %p9_p5 = scmp.ge.s32.totalorder %s12_s11, 4   ;;  %s446_s10 = smov %s448_s12 }
  0x90   :  { %11 = sbr.rel (!%p9_p5) target bundleno = 2 (0x2), region = 58 }

</bundles_post_ra>
